<compile_context>
chip_gen: v7x
topology: tpu7x:2x2x1
jax: 0.10.0
libtpu: 0.0.40
codegen_flags: <defaults>
</compile_context>

<pallas_src>
import functools

import jax
import jax.numpy as jnp
from jax import lax
from jax.experimental import pallas as pl
from jax.experimental.pallas import tpu as pltpu


# ---------------------------------------------------------------------------
# Fused kernel: one (batch, tile_n) lane-dense output tile of the synth graph.
# ---------------------------------------------------------------------------
def _drum_synth_kernel(dp_ref, noise_ref, o_ref, *,
                       attack_samples, tile_n, batch_size,
                       attack_in_first_tile):
    f32 = jnp.float32
    dp = dp_ref[...]                        # (B, 12) derived params (wrapper)

    f0         = dp[:, 0:1]                 # osc angular freq   [rad/sample]
    f0m        = dp[:, 1:2]                 # f0 * mod_amount
    log2_r_frq = dp[:, 2:3]                 # log2(freq-env decay rate)
    c_exp      = dp[:, 3:4]                 # f0m / (1 - r_frq)
    c_phase    = dp[:, 4:5]                 # f0m * ((A+1)/2 + 1/(1 - r_frq))
    log2_r_amp = dp[:, 5:6]                 # log2(amp-env decay rate)
    log2_g_ton = dp[:, 6:7]                 # log2(tonal_gain * in_gain)
    g_ton_att  = dp[:, 7:8]                 # tonal_gain * in_gain / A
    log2_r_nse = dp[:, 8:9]                 # log2(noise-env decay rate)
    log2_g_nse = dp[:, 9:10]                # log2(noise_gain * in_gain)
    g_nse_att  = dp[:, 10:11]               # noise_gain * in_gain / A
    out_lin    = dp[:, 11:12]               # output gain (linear)

    a_f = f32(attack_samples)
    half_inv_a = f32(0.5 / attack_samples)

    i = pl.program_id(0)
    lane = lax.broadcasted_iota(jnp.int32, (batch_size, tile_n), 1)
    t = (lane + i * tile_n).astype(f32)     # global sample index  (B, T)
    dt = t - a_f

    # Buffered noise block is (1, T); the (1,T)*(B,T) multiply below broadcasts
    # it across the batch sublanes in-register.  (B, T) noise passes through.
    noise = noise_ref[...].astype(f32)

    def tile_out(include_attack):
        # ExpDecayEnvelope with gains folded into the exponent:
        #   g * rate^(t-A) = exp2((t-A)*log2(rate) + log2(g))
        env_ton = jnp.exp2(dt * log2_r_amp + log2_g_ton)
        env_nse = jnp.exp2(dt * log2_r_nse + log2_g_nse)
        # Oscillator phase = f0*t + f0m*S(t), with the freq-env prefix sum
        # S(t) = (A+1)/2 + (1 - r^(t-A))/(1-r) folded into c_phase / c_exp.
        f0t = f0 * t
        phase = f0t + c_phase - c_exp * jnp.exp2(dt * log2_r_frq)
        if include_attack:
            # Linear-attack region (t < A): env = g*(t+1)/A,
            # S(t) = t(t+1)/(2A).  Only compiled for the first sample tile.
            env_ton = jnp.where(t < a_f, (t + 1.0) * g_ton_att, env_ton)
            env_nse = jnp.where(t < a_f, (t + 1.0) * g_nse_att, env_nse)
            s_att = t * (t + 1.0) * half_inv_a
            phase = jnp.where(t <= a_f, f0t + f0m * s_att, phase)
        mix = jnp.sin(phase) * env_ton + noise * env_nse    # already * in_gain
        return (out_lin * jnp.tanh(mix)).astype(o_ref.dtype)

    if attack_in_first_tile:
        # Attack region fits entirely inside tile 0 -> all later tiles use the
        # pure closed-form decay path (no compares / selects / attack math).
        @pl.when(i == 0)
        def _():
            o_ref[...] = tile_out(True)

        @pl.when(i > 0)
        def _():
            o_ref[...] = tile_out(False)
    else:
        o_ref[...] = tile_out(True)


# ---------------------------------------------------------------------------
# Wrapper
# ---------------------------------------------------------------------------
def simple_drum_synth_forward(params, noise, *, sample_rate, num_samples,
                              tile_n=8192):
    """Pallas equivalent of SimpleDrumSynth.forward(params, num_samples).

    params : (B, 9) float32 in [0, 1] — (decay, freq_decay, freq, freq_mod,
             in_gain, out_gain, noise_decay, tonal_gain, noise_gain).
    noise  : (1, >=num_samples) buffered noise (WhiteNoise registered buffer)
             or (B, >=num_samples) pre-drawn uniform [-1, 1) noise.
    """
    params = params.astype(jnp.float32)
    batch_size, n_params = params.shape
    assert n_params == 9, "SimpleDrumSynth expects 9 parameters"

    attack_samples = int(0.001 * sample_rate)
    assert num_samples > attack_samples, \
        "num_samples must be greater than attack_samples"
    assert noise.ndim == 2 and noise.shape[0] in (1, batch_size)
    assert noise.shape[1] >= num_samples, \
        "WhiteNoise buffer must cover num_samples (no wrap-around semantics)"
    noise_batch = noise.shape[0]

    # --- per-batch parameter preprocessing, hoisted out of the kernel -------
    cols = [params[:, k:k + 1] for k in range(9)]
    (decay, freq_decay, freq, freq_mod, in_gain, out_gain,
     noise_decay, tonal_gain, noise_gain) = cols

    def decay_rate(p01):                       # ExpDecayEnvelope parameters
        decay_ms = 10.0 + (2000.0 - 10.0) * p01
        decay_samples = decay_ms * sample_rate / 1000.0
        one_minus_rate = 6.91 / decay_samples
        return 1.0 - one_minus_rate, one_minus_rate

    r_amp, _ = decay_rate(decay)
    r_frq, omr_frq = decay_rate(freq_decay)
    r_nse, _ = decay_rate(noise_decay)

    def db_gain(p01, lo, hi):                  # Gain / Tanh parameters
        return 10.0 ** ((lo + (hi - lo) * p01) / 20.0)

    in_lin = db_gain(in_gain, -24.0, 24.0)
    out_lin = db_gain(out_gain, -60.0, 6.0)
    g_ton = db_gain(tonal_gain, -60.0, 6.0) * in_lin     # folded into amp env
    g_nse = db_gain(noise_gain, -60.0, 6.0) * in_lin     # folded into noise env

    f0 = 2.0 * jnp.pi * (20.0 + (2000.0 - 20.0) * freq) / sample_rate
    f0m = f0 * (-1.0 + 3.0 * freq_mod)                   # f0 * mod_amount
    inv_omr = 1.0 / omr_frq
    attack_incr = 1.0 / attack_samples

    derived = jnp.concatenate([
        f0, f0m, jnp.log2(r_frq), f0m * inv_omr,
        f0m * (0.5 * (attack_samples + 1.0) + inv_omr),
        jnp.log2(r_amp), jnp.log2(g_ton), g_ton * attack_incr,
        jnp.log2(r_nse), jnp.log2(g_nse), g_nse * attack_incr,
        out_lin,
    ], axis=-1).astype(jnp.float32)                       # (B, 12)

    # --- lane-dense tiling with padding (never a ragged single block) -------
    padded = ((num_samples + 127) // 128) * 128
    max_tile = min(tile_n, padded)
    tile, tile_multi = 128, None
    for cand in range(128, max_tile + 1, 128):
        if padded % cand == 0:
            tile = cand
            if padded // cand >= 2:
                tile_multi = cand           # largest tile still giving grid>=2
    if tile_multi is not None:              # keep >=2 tiles for v7x's 2 TCs
        tile = tile_multi
    grid = (padded // tile,)

    noise = noise[:, :num_samples].astype(jnp.float32)
    if padded != num_samples:
        noise = jnp.pad(noise, ((0, 0), (0, padded - num_samples)))

    kernel = functools.partial(
        _drum_synth_kernel,
        attack_samples=attack_samples,
        tile_n=tile,
        batch_size=batch_size,
        attack_in_first_tile=(attack_samples <= tile),
    )

    out = pl.pallas_call(
        kernel,
        out_shape=jax.ShapeDtypeStruct((batch_size, padded), jnp.float32),
        grid=grid,
        in_specs=[
            pl.BlockSpec((batch_size, 12), lambda i: (0, 0)),      # resident params
            pl.BlockSpec((noise_batch, tile), lambda i: (0, i)),   # noise tile
        ],
        out_specs=pl.BlockSpec((batch_size, tile), lambda i: (0, i)),
        compiler_params=pltpu.CompilerParams(
            dimension_semantics=("parallel",),                     # tiles independent
        ),
    )(derived, noise)

    return out[:, :num_samples]


# ---------------------------------------------------------------------------
# Pure-JAX reference (mirrors the PyTorch module op-for-op: cumsum / cumprod)
# ---------------------------------------------------------------------------
def _reference_forward(params, noise_buf, sample_rate, num_samples):
    A = int(0.001 * sample_rate)
    attack_incr = 1.0 / A
    B = params.shape[0]

    (decay, freq_decay, freq, freq_mod, in_gain, out_gain,
     noise_decay, tonal_gain, noise_gain) = jnp.split(params, 9, axis=-1)

    def exp_decay_env(p01):
        decay_ms = 10.0 + (2000.0 - 10.0) * p01
        decay_samples = decay_ms * sample_rate / 1000.0
        rate = 1.0 - 6.91 / decay_samples
        dlen = num_samples - A
        env = jnp.concatenate(
            [jnp.ones((B, 1), jnp.float32),
             jnp.broadcast_to(rate, (B, dlen - 1))], axis=-1)
        env = jnp.cumprod(env, axis=-1)
        attack = jnp.cumsum(jnp.full((B, A), attack_incr, jnp.float32), axis=-1)
        return jnp.concatenate([attack, env], axis=-1)

    def osc(freq, mod_env, mod_amount):
        f0 = 20.0 + (2000.0 - 20.0) * freq
        f0 = 2.0 * jnp.pi * f0 / sample_rate
        freq_env = jnp.ones((B, num_samples), jnp.float32) * f0
        mod_amt = -1.0 + 3.0 * mod_amount
        freq_env = freq_env + mod_env * mod_amt * f0
        freq_env = jnp.concatenate(
            [jnp.zeros((B, 1), jnp.float32), freq_env], axis=-1)
        phase = jnp.cumsum(freq_env, axis=-1)[:, :-1]
        return jnp.sin(phase)

    def db_gain(p01, lo, hi):
        return 10.0 ** ((lo + (hi - lo) * p01) / 20.0)

    freq_env = exp_decay_env(freq_decay)
    y = osc(freq, freq_env, freq_mod)
    y = y * exp_decay_env(decay)
    noise = jnp.broadcast_to(noise_buf[:, :num_samples], (B, num_samples))
    noise = noise * exp_decay_env(noise_decay)
    noise = db_gain(noise_gain, -60.0, 6.0) * noise
    y = db_gain(tonal_gain, -60.0, 6.0) * y
    y = y + noise
    y = jnp.tanh(db_gain(in_gain, -24.0, 24.0) * y)
    y = db_gain(out_gain, -60.0, 6.0) * y
    return y


if __name__ == "__main__":
    key = jax.random.PRNGKey(0)

    sample_rate = 48000
    num_samples = 300           # > attack_samples (48); NOT a multiple of 128
                                # -> exercises the padded, multi-tile grid path
    batch_size = 8              # full sublane occupancy per vreg
    buffer_size = 512           # >= num_samples (buffered WhiteNoise)

    k_params, k_noise = jax.random.split(key)
    # Normalized synth parameters in [0, 1], shape (B, 9).
    params = jax.random.uniform(k_params, (batch_size, 9), dtype=jnp.float32)
    # Buffered white noise exactly as WhiteNoise.__init__: rand(1, buf) * 2 - 1.
    noise_buf = jax.random.uniform(k_noise, (1, buffer_size),
                                   dtype=jnp.float32) * 2.0 - 1.0

    y = simple_drum_synth_forward(params, noise_buf,
                                  sample_rate=sample_rate,
                                  num_samples=num_samples)
    y = jax.block_until_ready(y)

    assert y.shape == (batch_size, num_samples)
    assert y.dtype == jnp.float32

    y_ref = _reference_forward(params, noise_buf, sample_rate, num_samples)
    max_err = float(jnp.max(jnp.abs(y - y_ref)))
    # Tolerance covers f32 cumsum-reference vs closed-form-phase divergence.
    assert max_err < 2e-3, f"mismatch vs reference, max abs err = {max_err}"

    print("KERNEL_OK")
</pallas_src>

<mosaic_0001>
module attributes {stable_mosaic.version = 11 : i64} {
  func.func @_drum_synth_kernel(%arg0: i32, %arg1: memref<8x12xf32, #tpu.memory_space<vmem>>, %arg2: memref<1x128xf32, #tpu.memory_space<vmem>>, %arg3: memref<8x128xf32, #tpu.memory_space<vmem>>) attributes {dimension_semantics = [#tpu.dimension_semantics<parallel>], iteration_bounds = array<i64: 3>, scalar_prefetch = 0 : i64, scratch_operands = 0 : i64, tpu.core_type = #tpu.core_type<tc>, window_params = [{pipeline_mode = #tpu.pipeline_mode<synchronous>, transform_indices = @transform_0, window_bounds = array<i64: 8, 12>}, {transform_indices = @transform_1, window_bounds = array<i64: 1, 128>}, {transform_indices = @transform_2, window_bounds = array<i64: 8, 128>}]} {
    %c0 = arith.constant 0 : index
    %c0_0 = arith.constant 0 : index
    %0 = vector.load %arg1[%c0, %c0_0] : memref<8x12xf32, #tpu.memory_space<vmem>>, vector<8x12xf32>
    %1 = vector.extract_strided_slice %0 {offsets = [0, 0], sizes = [8, 1], strides = [1, 1]} : vector<8x12xf32> to vector<8x1xf32>
    %2 = vector.extract_strided_slice %0 {offsets = [0, 1], sizes = [8, 1], strides = [1, 1]} : vector<8x12xf32> to vector<8x1xf32>
    %3 = vector.extract_strided_slice %0 {offsets = [0, 2], sizes = [8, 1], strides = [1, 1]} : vector<8x12xf32> to vector<8x1xf32>
    %4 = vector.extract_strided_slice %0 {offsets = [0, 3], sizes = [8, 1], strides = [1, 1]} : vector<8x12xf32> to vector<8x1xf32>
    %5 = vector.extract_strided_slice %0 {offsets = [0, 4], sizes = [8, 1], strides = [1, 1]} : vector<8x12xf32> to vector<8x1xf32>
    %6 = vector.extract_strided_slice %0 {offsets = [0, 5], sizes = [8, 1], strides = [1, 1]} : vector<8x12xf32> to vector<8x1xf32>
    %7 = vector.extract_strided_slice %0 {offsets = [0, 6], sizes = [8, 1], strides = [1, 1]} : vector<8x12xf32> to vector<8x1xf32>
    %8 = vector.extract_strided_slice %0 {offsets = [0, 7], sizes = [8, 1], strides = [1, 1]} : vector<8x12xf32> to vector<8x1xf32>
    %9 = vector.extract_strided_slice %0 {offsets = [0, 8], sizes = [8, 1], strides = [1, 1]} : vector<8x12xf32> to vector<8x1xf32>
    %10 = vector.extract_strided_slice %0 {offsets = [0, 9], sizes = [8, 1], strides = [1, 1]} : vector<8x12xf32> to vector<8x1xf32>
    %11 = vector.extract_strided_slice %0 {offsets = [0, 10], sizes = [8, 1], strides = [1, 1]} : vector<8x12xf32> to vector<8x1xf32>
    %12 = vector.extract_strided_slice %0 {offsets = [0, 11], sizes = [8, 1], strides = [1, 1]} : vector<8x12xf32> to vector<8x1xf32>
    %13 = tpu.iota {dimensions = array<i32: 1>} : vector<8x128xi32>
    %c128_i32 = arith.constant 128 : i32
    %14 = arith.muli %arg0, %c128_i32 : i32
    %15 = vector.broadcast %14 : i32 to vector<8x128xi32>
    %16 = arith.addi %13, %15 : vector<8x128xi32>
    %17 = arith.sitofp %16 : vector<8x128xi32> to vector<8x128xf32>
    %cst = arith.constant 4.800000e+01 : f32
    %18 = vector.broadcast %cst : f32 to vector<8x128xf32>
    %19 = arith.subf %17, %18 : vector<8x128xf32>
    %c0_1 = arith.constant 0 : index
    %c0_2 = arith.constant 0 : index
    %20 = vector.load %arg2[%c0_1, %c0_2] : memref<1x128xf32, #tpu.memory_space<vmem>>, vector<1x128xf32>
    %c0_i32 = arith.constant 0 : i32
    %21 = arith.cmpi eq, %arg0, %c0_i32 : i32
    %22 = arith.extui %21 : i1 to i32
    %cst_3 = arith.constant 4.800000e+01 : f32
    %cst_4 = arith.constant 0.010416667 : f32
    %c0_i32_5 = arith.constant 0 : i32
    %23 = arith.cmpi ne, %22, %c0_i32_5 : i32
    scf.if %23 {
      %27 = vector.broadcast %6 : vector<8x1xf32> to vector<8x128xf32>
      %28 = arith.mulf %19, %27 : vector<8x128xf32>
      %29 = vector.broadcast %7 : vector<8x1xf32> to vector<8x128xf32>
      %30 = arith.addf %28, %29 : vector<8x128xf32>
      %31 = math.exp2 %30 : vector<8x128xf32>
      %32 = vector.broadcast %9 : vector<8x1xf32> to vector<8x128xf32>
      %33 = arith.mulf %19, %32 : vector<8x128xf32>
      %34 = vector.broadcast %10 : vector<8x1xf32> to vector<8x128xf32>
      %35 = arith.addf %33, %34 : vector<8x128xf32>
      %36 = math.exp2 %35 : vector<8x128xf32>
      %37 = vector.broadcast %1 : vector<8x1xf32> to vector<8x128xf32>
      %38 = arith.mulf %37, %17 : vector<8x128xf32>
      %39 = vector.broadcast %5 : vector<8x1xf32> to vector<8x128xf32>
      %40 = arith.addf %38, %39 : vector<8x128xf32>
      %41 = vector.broadcast %3 : vector<8x1xf32> to vector<8x128xf32>
      %42 = arith.mulf %19, %41 : vector<8x128xf32>
      %43 = math.exp2 %42 : vector<8x128xf32>
      %44 = vector.broadcast %4 : vector<8x1xf32> to vector<8x128xf32>
      %45 = arith.mulf %44, %43 : vector<8x128xf32>
      %46 = arith.subf %40, %45 : vector<8x128xf32>
      %47 = vector.broadcast %cst_3 : f32 to vector<8x128xf32>
      %48 = arith.cmpf olt, %17, %47 : vector<8x128xf32>
      %cst_8 = arith.constant 1.000000e+00 : f32
      %49 = vector.broadcast %cst_8 : f32 to vector<8x128xf32>
      %50 = arith.addf %17, %49 : vector<8x128xf32>
      %51 = vector.broadcast %8 : vector<8x1xf32> to vector<8x128xf32>
      %52 = arith.mulf %50, %51 : vector<8x128xf32>
      %53 = arith.select %48, %52, %31 : vector<8x128xi1>, vector<8x128xf32>
      %54 = vector.broadcast %cst_3 : f32 to vector<8x128xf32>
      %55 = arith.cmpf olt, %17, %54 : vector<8x128xf32>
      %cst_9 = arith.constant 1.000000e+00 : f32
      %56 = vector.broadcast %cst_9 : f32 to vector<8x128xf32>
      %57 = arith.addf %17, %56 : vector<8x128xf32>
      %58 = vector.broadcast %11 : vector<8x1xf32> to vector<8x128xf32>
      %59 = arith.mulf %57, %58 : vector<8x128xf32>
      %60 = arith.select %55, %59, %36 : vector<8x128xi1>, vector<8x128xf32>
      %cst_10 = arith.constant 1.000000e+00 : f32
      %61 = vector.broadcast %cst_10 : f32 to vector<8x128xf32>
      %62 = arith.addf %17, %61 : vector<8x128xf32>
      %63 = arith.mulf %17, %62 : vector<8x128xf32>
      %64 = vector.broadcast %cst_4 : f32 to vector<8x128xf32>
      %65 = arith.mulf %63, %64 : vector<8x128xf32>
      %66 = vector.broadcast %cst_3 : f32 to vector<8x128xf32>
      %67 = arith.cmpf ole, %17, %66 : vector<8x128xf32>
      %68 = vector.broadcast %2 : vector<8x1xf32> to vector<8x128xf32>
      %69 = arith.mulf %68, %65 : vector<8x128xf32>
      %70 = arith.addf %38, %69 : vector<8x128xf32>
      %71 = arith.select %67, %70, %46 : vector<8x128xi1>, vector<8x128xf32>
      %72 = math.sin %71 : vector<8x128xf32>
      %73 = arith.mulf %72, %53 : vector<8x128xf32>
      %74 = vector.broadcast %20 : vector<1x128xf32> to vector<8x128xf32>
      %75 = arith.mulf %74, %60 : vector<8x128xf32>
      %76 = arith.addf %73, %75 : vector<8x128xf32>
      %77 = math.tanh %76 : vector<8x128xf32>
      %78 = vector.broadcast %12 : vector<8x1xf32> to vector<8x128xf32>
      %79 = arith.mulf %78, %77 : vector<8x128xf32>
      %c0_11 = arith.constant 0 : index
      %c0_12 = arith.constant 0 : index
      %80 = vector.load %arg3[%c0_11, %c0_12] : memref<8x128xf32, #tpu.memory_space<vmem>>, vector<8x128xf32>
      tpu.vector_store %arg3[%c0_11, %c0_12], %79 {strides = array<i32>} : memref<8x128xf32, #tpu.memory_space<vmem>>, vector<8x128xf32>,
    } else {
    }
    %c0_i32_6 = arith.constant 0 : i32
    %24 = arith.cmpi sgt, %arg0, %c0_i32_6 : i32
    %25 = arith.extui %24 : i1 to i32
    %c0_i32_7 = arith.constant 0 : i32
    %26 = arith.cmpi ne, %25, %c0_i32_7 : i32
    scf.if %26 {
      %27 = vector.broadcast %6 : vector<8x1xf32> to vector<8x128xf32>
      %28 = arith.mulf %19, %27 : vector<8x128xf32>
      %29 = vector.broadcast %7 : vector<8x1xf32> to vector<8x128xf32>
      %30 = arith.addf %28, %29 : vector<8x128xf32>
      %31 = math.exp2 %30 : vector<8x128xf32>
      %32 = vector.broadcast %9 : vector<8x1xf32> to vector<8x128xf32>
      %33 = arith.mulf %19, %32 : vector<8x128xf32>
      %34 = vector.broadcast %10 : vector<8x1xf32> to vector<8x128xf32>
      %35 = arith.addf %33, %34 : vector<8x128xf32>
      %36 = math.exp2 %35 : vector<8x128xf32>
      %37 = vector.broadcast %1 : vector<8x1xf32> to vector<8x128xf32>
      %38 = arith.mulf %37, %17 : vector<8x128xf32>
      %39 = vector.broadcast %5 : vector<8x1xf32> to vector<8x128xf32>
      %40 = arith.addf %38, %39 : vector<8x128xf32>
      %41 = vector.broadcast %3 : vector<8x1xf32> to vector<8x128xf32>
      %42 = arith.mulf %19, %41 : vector<8x128xf32>
      %43 = math.exp2 %42 : vector<8x128xf32>
      %44 = vector.broadcast %4 : vector<8x1xf32> to vector<8x128xf32>
      %45 = arith.mulf %44, %43 : vector<8x128xf32>
      %46 = arith.subf %40, %45 : vector<8x128xf32>
      %47 = math.sin %46 : vector<8x128xf32>
      %48 = arith.mulf %47, %31 : vector<8x128xf32>
      %49 = vector.broadcast %20 : vector<1x128xf32> to vector<8x128xf32>
      %50 = arith.mulf %49, %36 : vector<8x128xf32>
      %51 = arith.addf %48, %50 : vector<8x128xf32>
      %52 = math.tanh %51 : vector<8x128xf32>
      %53 = vector.broadcast %12 : vector<8x1xf32> to vector<8x128xf32>
      %54 = arith.mulf %53, %52 : vector<8x128xf32>
      %c0_8 = arith.constant 0 : index
      %c0_9 = arith.constant 0 : index
      %55 = vector.load %arg3[%c0_8, %c0_9] : memref<8x128xf32, #tpu.memory_space<vmem>>, vector<8x128xf32>
      tpu.vector_store %arg3[%c0_8, %c0_9], %54 {strides = array<i32>} : memref<8x128xf32, #tpu.memory_space<vmem>>, vector<8x128xf32>,
    } else {
    }
    return
  }
  func.func @transform_0(%arg0: i32) -> (i32, i32) {
    %c0_i32 = arith.constant 0 : i32
    %c0_i32_0 = arith.constant 0 : i32
    %c0_i32_1 = arith.constant 0 : i32
    return %c0_i32, %c0_i32_0 : i32, i32
  }
  func.func @transform_1(%arg0: i32) -> (i32, i32) {
    %c0_i32 = arith.constant 0 : i32
    %c0_i32_0 = arith.constant 0 : i32
    return %c0_i32, %arg0 : i32, i32
  }
  func.func @transform_2(%arg0: i32) -> (i32, i32) {
    %c0_i32 = arith.constant 0 : i32
    %c0_i32_0 = arith.constant 0 : i32
    return %c0_i32, %arg0 : i32, i32
  }
}

</mosaic_0001>

<bundles_post_ra>
// kernel: tpu_custom_call.1
= control target key start
LH: loop header
LB: loop body
LE: loop exit
PB: predicated region body
PF: predicated region fallthrough
CT: control target
= control target key end

     0   :  { %7 = vsyncpa [#allocation3], 0  ;;  %s1147_s0 = inlined_call_operand.hbm [shape: f32[8,12], index: 0, kind: input, shape index: {}]   ;;  %s1148_s1 = inlined_call_operand.vmem [shape: f32[1,384], index: 1, kind: input, shape index: {}]   ;;  %s1149_s2 = inlined_call_operand.hbm [shape: f32[8,384], index: 2, kind: output, shape index: {}]  }
   0x1   :  { %8 = vsyncpa [#allocation4], 0 }
   0x2   :  { %10 = vsyncpa [#allocation4 + $0x1], 0  ;;  %s907_s9 = smov 0   ;;  %s909_s10 = smov 0  }
   0x3   :  { %s911_s11 = smov 0   ;;  %s913_s12 = smov 0  }
   0x4 LB: > { %s928_s13 = sadd.s32 4294967295, %s855_s12   ;;  %s602_s14 = sadd.s32 4294967294, %s855_s12   ;;  %s855_s12 = sphi %s913_s12, %s1166_s12   ;;  %s851_s11 = sphi %s911_s11, %s1165_s11   ;;  %s847_s10 = sphi %s909_s10, %s1164_s10   ;;  %s843_s9 = sphi %s907_s9, %s1163_s9  }
   0x5   : > { %s932_s15 = sadd.s32 1, %s855_s12   ;;  %s70_s16 = sadd.s32 1, %s851_s11 }
   0x6   : > { %s67_s17 = ssub.s32 %s855_s12, %s932_s15  ;;  %p80_p0 = scmp.ne.s32.totalorder %s851_s11, %s847_s10 }
   0x7   : > { %p68_p1 = scmp.eq.s32.totalorder %s67_s17, 0  ;;  %p81_p2 = scmp.eq.s32.totalorder %s928_s13, 2 }
   0x8   : > { %p86_p3 = scmp.ne.s32.totalorder %s847_s10, %s843_s9  ;;  %p87_p4 = scmp.eq.s32.totalorder %s602_s14, 2 }
   0x9   : > { %s943_s18 = scalar_select %p68_p1, %s851_s11, %s70_s16  }
   0xa   : > { %p945_p5 = por %p81_p2, %p80_p0  ;;  %p949_p6 = por %p87_p4, %p86_p3 }
   0xb   : > { %p603_p7 = scmp.ge.s32.totalorder %s855_s12, 1  ;;  %p94_p8 = scmp.lt.s32.totalorder %s855_s12, 4 }
   0xc   : > { %s1153_s19 = scalar_select %p945_p5, 1, 0 }
   0xd   : > { %s1154_s20 = scalar_select %p949_p6, 1, 0 }
   0xe   : > { %p1150_p10 = scmp.eq.s32.totalorder %s928_s13, 0  ;;  %p957_p11 = pnand %p603_p7, %p94_p8 }
   0xf   : > { %s857_s22 = smov [#allocation2]   ;;  %s761_s27 = scalar_lea.hbm %s1147_s0, 128 }
  0x10   : > { %s1155_s21 = scalar_select %p957_p11, 1, 0 }
  0x11   : > { %s107_s23 = sshll.u32 %s857_s22, 4  ;;  %p639_p12 = pneg %p957_p11  ;;  %s108_s23 = int_to_ptr.vmem [resolvable:$true] %s107_s23 }
  0x12   : > { %p762_p0 = scmp.ne.s32.totalorder %s1147_s0, %s761_s27  ;;  %p768_p4 = scmp.lt.u32.totalorder %s761_s27, %s1147_s0 }
  0x13   : > { %p965_p13 = pnand %p1150_p10, %p639_p12 }
  0x15   : > { %p763_p1 = pneg %p965_p13 }
  0x17   : > { %p764_p2 = pnand %p763_p1, %p762_p0 }
  0x19   : > { %p765_p3 = pneg %p764_p2 }
  0x1b   : > { %p770_p7 = pnand %p768_p4, %p765_p3 }
  0x1d   : > { %773 = shalt.err (!%p770_p7)
}
  0x1e   : > { %s774_s4 = scalar_lea.vmem %s108_s23, 128  ;;  %p782_p10 = scmp.lt.s32.totalorder %s108_s23, %s108_s23 }
  0x1f   : > { %p775_p8 = scmp.ne.s32.totalorder %s108_s23, %s774_s4  ;;  %p783_p6 = scmp.lt.s32.totalorder %s774_s4, %s774_s4 }
  0x21   : > { %p777_p12 = pnand %p775_p8, %p763_p1  ;;  %p784_p5 = por %p783_p6, %p782_p10 }
  0x23   : > { %p778_p9 = pneg %p777_p12 }
  0x25   : > { %p785_p11 = pnand %p784_p5, %p778_p9 }
  0x27   : > { %788 = shalt.err (!%p785_p11)
}
  0x28   : > { %642 = dma.hbm_to_vmem [thread:$0]  (!%p965_p13), %s1147_s0, 128, %s108_s23, [#allocation3]  }
  0x29   : > { %p1157_p0 = scmp.ne.s32.totalorder %s1155_s21, 0 }
  0x2a   : > { %p1158_p2 = scmp.eq.s32.totalorder (!%p1157_p0), %s928_s13, 0 }
  0x2b   : > { %126 = sbr.rel (%p1157_p0) target bundleno = 570 (0x23a), region = 28 }
  0x32   : > { %834 = dma.done.wait (%p1158_p2), [#allocation3], 128   ;;  %p1159_p1 = pmov %p1158_p2 }
  0x33   : > { %p146_p5 = scmp.lt.s32.totalorder %s928_s13, 2  ;;  %s143_s7 = sand.u32 1, %s847_s10   ;;  %v150_v0 = vlaneseq  ;;  %v1005_v5 = vld [vmem:[#allocation2] sm:$0xff] }
  0x34   : > { %836 = vsyncadd (%p1159_p1), [#allocation3], 4294967168  ;;  %s608_s8 = sshll.u32 %s143_s7, 3  ;;  %s609_s14 = sshll.u32 %s928_s13, 7 }
  0x35   : > { %s147_s16 = scalar_select %p146_p5, %s928_s13, 2  ;;  %v151_v1 = vand.u32 127, %v150_v0  ;;  %v153_v2 = vstv %s609_s14 }
  0x36   : > { %s1012_s23 = scalar_lea.vmem [#allocation5], %s608_s8  ;;  %p1160_p6 = scmp.ne.s32.totalorder %s928_s13, 0 }
  0x37   : > { %s148_s22 = scalar_lea.vmem %s1148_s1, %s147_s16  ;;  %v154_v3 = vadd.s32 %v153_v2, %v151_v1  ;;  %v858_v8 = vmov (!%p1160_p6), 2   ;;  %v859_v9 = vmov (!%p1160_p6), 4   ;;  %v860_v10 = vmov (!%p1160_p6), 0  }
  0x38   : > { %v1007_v6 = vld [vmem:[%s148_s22] sm:$0x1]  ;;  %161 = sbr.rel (%p1160_p6) target bundleno = 300 (0x12c), region = 36  ;;  %716 = vset.pattern.permute.xlu0 (!%p1160_p6), %v858_v8  ;;  %718 = vset.pattern.permute.xlu1 (!%p1160_p6), %v859_v9  ;;  %v861_v11 = vmov (!%p1160_p6), 3   ;;  %v862_v12 = vmov (!%p1160_p6), 1   ;;  %v863_v13 = vmov (!%p1160_p6), 5  }
  0x39   : > { %v1003_v4 = vcvt.s32.f32 %v154_v3  ;;  %196 = vperm.xlu0 (!%p1160_p6), %716, %v1005_v5   ;;  %191 = vperm.xlu1 (!%p1160_p6), %718, %v1005_v5   ;;  %v864_v14 = vmov (!%p1160_p6), 8   ;;  %v865_v15 = vmov (!%p1160_p6), 9   ;;  %v866_v16 = vmov (!%p1160_p6), 6  }
  0x3a   : > { %v867_v17 = vmov (!%p1160_p6), 11   ;;  %v868_v18 = vmov (!%p1160_p6), 7   ;;  %v869_v19 = vmov (!%p1160_p6), 10   ;;  %v870_v47 = vmov (!%p1160_p6), 683565275  }
  0x3b   : > { %v1010_v7 = vadd.f32 -48.0, %v1003_v4  ;;  %v1029_v22 = vadd.f32 (!%p1160_p6), 1.0, %v1003_v4  ;;  %vm223_vm0 = vcmp.le.f32.partialorder (!%p1160_p6), %v1003_v4, 48.0  ;;  %v871_v49 = vmov (!%p1160_p6), 2475754826  }
  0x3c   : > { %v872_v52 = vmov (!%p1160_p6), 2131351028   ;;  %v873_v55 = vmov (!%p1160_p6), 2102212464   ;;  %v874_v58 = vmov (!%p1160_p6), 920167782  }
  0x3d   : > { %717 = vset.pattern.permute.xlu0 (!%p1160_p6), %v860_v10  ;;  %719 = vset.pattern.permute.xlu1 (!%p1160_p6), %v861_v11  ;;  %v221_v24 = vmul.f32 (!%p1160_p6), %v1029_v22, %v1003_v4  ;;  %v875_v61 = vmov (!%p1160_p6), 1326507024   ;;  %vm207_vm11 = vcmp.lt.f32.partialorder (!%p1160_p6), %v1003_v4, 48.0 }
  0x3e   : > { %186 = vperm.xlu0 (!%p1160_p6), %717, %v1005_v5   ;;  %202 = vperm.xlu1 (!%p1160_p6), %719, %v1005_v5  }
  0x3f   : > { %v222_v27 = vmul.f32 0.010416667, %v221_v24 }
  0x42   : > { %720 = vset.pattern.permute.xlu1 %v862_v12  ;;  %721 = vset.pattern.permute.xlu0 %v863_v13 }
  0x43   : > { %225 = vperm.xlu1 %720, %v1005_v5   ;;  %164 = vperm.xlu0 %721, %v1005_v5  }
  0x47   : > { %722 = vset.pattern.permute.xlu1 %v864_v14  ;;  %724 = vset.pattern.permute.xlu0 %v865_v15 }
  0x48   : > { %175 = vperm.xlu1 %722, %v1005_v5   ;;  %180 = vperm.xlu0 %724, %v1005_v5  }
  0x4c   : > { %723 = vset.pattern.permute.xlu1 %v866_v16  ;;  %727 = vset.pattern.permute.xlu0 %v867_v17 }
  0x4d   : > { %169 = vperm.xlu1 %723, %v1005_v5   ;;  %346 = vperm.xlu0 %727, %v1005_v5  }
  0x51   : > { %725 = vset.pattern.permute.xlu1 %v868_v18 }
  0x52   : > { %210 = vperm.xlu1 %725, %v1005_v5  }
  0x56   : > { %726 = vset.pattern.permute.xlu1 %v869_v19 }
  0x57   : > { %216 = vperm.xlu1 %726, %v1005_v5  }
  0xb8   : > { %v197_v20 = vpop.permute.xlu0 %196  ;;  %v192_v21 = vpop.permute.xlu1 %191 }
  0xb9   : > { %v199_v23 = vmul.f32 %v1010_v7, %v197_v20 }
  0xbb   : > { %728 = vpow2.f32 %v199_v23 }
  0xbd   : > { %v203_v25 = vpop.permute.xlu1 %202  ;;  %v187_v26 = vpop.permute.xlu0 %186 }
  0xbe   : > { %v189_v28 = vmul.f32 %v187_v26, %v1003_v4 }
  0xc0   : > { %v194_v32 = vadd.f32 %v192_v21, %v189_v28 }
  0xc2   : > { %v226_v29 = vpop.permute.xlu1 %225 }
  0xc3   : > { %v228_v30 = vmul.f32 %v226_v29, %v222_v27 }
  0xc5   : > { %v729_v31 = vpop.eup %728  ;;  %v229_v35 = vadd.f32 %v228_v30, %v189_v28 }
  0xc6   : > { %v205_v33 = vmul.f32 %v729_v31, %v203_v25 }
  0xc8   : > { %v206_v34 = vsub.f32 %v194_v32, %v205_v33 }
  0xca   : > { %v1036_v36 = vsel %vm223_vm0, %v229_v35, %v206_v34 }
  0xcb   : > { %v234_v37 = vand.u32 2139095040, %v1036_v36  ;;  %v231_v41 = vand.u32 2147483647, %v1036_v36  ;;  %vm233_vm8 = vcmp.lt.s32.totalorder %v1036_v36, 0  ;;  %vm323_vm14 = vweird.f32 %v1036_v36 }
  0xcd   : > { %v235_v38 = vshrl.u32 %v234_v37, 23  ;;  %v238_v44 = vand.u32 8388607, %v231_v41  ;;  %vm232_vm9 = vcmp.le.f32.partialorder %v231_v41, 0.7853982 }
  0xcf   : > { %v612_v39 = vadd.s32 4294967169, %v235_v38  ;;  %v239_v63 = vor.u32 8388608, %v238_v44 }
  0xd1   : > { %v241_v40 = vadd.s32 1, %v612_v39  ;;  %v279_v18 = vshll.u32 %v239_v63, 8 }
  0xd3   : > { %vm242_vm1 = vcmp.gt.s32.totalorder %v241_v40, 0 }
  0xd4   : > { %v243_v42 = vsel %vm242_vm1, %v241_v40, 0 }
  0xd5   : > { %v245_v43 = vand.u32 31, %v243_v42  ;;  %v244_v46 = vshrl.u32 %v243_v42, 5 }
  0xd7   : > { %v246_v45 = vsub.s32 32, %v245_v43  ;;  %v248_v48 = vshll.u32 %v870_v47, %v245_v43  ;;  %v251_v50 = vshll.u32 %v871_v49, %v245_v43  ;;  %v254_v54 = vshll.u32 %v872_v52, %v245_v43 }
  0xd8   : > { %v257_v57 = vshll.u32 %v873_v55, %v245_v43  ;;  %v260_v60 = vshll.u32 %v874_v58, %v245_v43  ;;  %vm263_vm2 = vcmp.lt.s32.totalorder %v244_v46, 1  ;;  %vm266_vm3 = vcmp.lt.s32.totalorder %v244_v46, 4 }
  0xd9   : > { %v249_v51 = vshrl.u32 %v871_v49, %v246_v45  ;;  %v252_v53 = vshrl.u32 %v872_v52, %v246_v45  ;;  %v255_v56 = vshrl.u32 %v873_v55, %v246_v45  ;;  %v258_v59 = vshrl.u32 %v874_v58, %v246_v45 }
  0xda   : > { %v261_v62 = vshrl.u32 %v875_v61, %v246_v45  ;;  %v247_v13 = vshrl.u32 %v870_v47, %v246_v45  ;;  %vm265_vm4 = vcmp.lt.s32.totalorder %v244_v46, 3  ;;  %vm264_vm5 = vcmp.lt.s32.totalorder %v244_v46, 2 }
  0xdb   : > { %v250_v1 = vor.u32 %v249_v51, %v248_v48  ;;  %v253_v2 = vor.u32 %v252_v53, %v251_v50  ;;  %v256_v3 = vor.u32 %v255_v56, %v254_v54  ;;  %v259_v8 = vor.u32 %v258_v59, %v257_v57  ;;  %v165_v50 = vpop.permute.xlu0 %164  ;;  %v176_v54 = vpop.permute.xlu1 %175 }
  0xdc   : > { %v262_v9 = vor.u32 %v261_v62, %v260_v60  ;;  %v178_v55 = vmul.f32 %v1010_v7, %v176_v54  ;;  %v167_v61 = vmul.f32 %v1010_v7, %v165_v50 }
  0xdd   : > { %v268_v10 = vsel %vm266_vm3, %v256_v3, 2102212464  ;;  %v271_v11 = vsel %vm263_vm2, %v250_v1, %v253_v2  ;;  %v275_v12 = vsel %vm263_vm2, %v253_v2, %v256_v3  ;;  %v272_v14 = vsel %vm266_vm3, %v259_v8, 920167782 }
  0xde   : > { %v276_v15 = vsel %vm266_vm3, %v262_v9, 1326507024  ;;  %v273_v16 = vsel %vm265_vm4, %v256_v3, %v272_v14  ;;  %v267_v19 = vsel %vm263_vm2, %v247_v13, %v250_v1  ;;  %v269_v20 = vsel %vm265_vm4, %v253_v2, %v268_v10 }
  0xdf   : > { %v277_v17 = vsel %vm265_vm4, %v259_v8, %v276_v15  ;;  %v274_v21 = vsel %vm264_vm5, %v271_v11, %v273_v16  ;;  %v270_v28 = vsel %vm264_vm5, %v267_v19, %v269_v20  ;;  %v181_v58 = vpop.permute.xlu0 %180  ;;  %v170_v1 = vpop.permute.xlu1 %169  ;;  %v338_v13 = vshrl.u32 %v150_v0, 7 }
  0xe0   : > { %v278_v23 = vsel %vm264_vm5, %v275_v12, %v277_v17  ;;  %v1045_v26 = vmul.u32.u64.low %v279_v18, %v274_v21  ;;  %v1046_v27 = vmul.u32.u64.high %v279_v18, %v274_v21, %v1045_v26  ;;  %v286_v30 = vmul.u32 %v279_v18, %v270_v28 }
  0xe1   : > { %v1042_v24 = vmul.u32.u64.low %v279_v18, %v278_v23  ;;  %v1043_v25 = vmul.u32.u64.high %v279_v18, %v278_v23, %v1042_v24  ;;  %v183_v62 = vadd.f32 %v181_v58, %v178_v55  ;;  %v172_v9 = vadd.f32 %v170_v1, %v167_v61 }
  0xe2   : > { %v289_v29 = vadd.s32 1, %v1046_v27  ;;  %v339_v17 = vsub.s32 0, %v338_v13 }
  0xe3   : > { %vm288_vm6 = vc.u32 %v1043_v25, %v1045_v26  ;;  %v287_v44 = vadd.s32 %v1045_v26, %v1043_v25  ;;  %730 = vpow2.f32 %v183_v62  ;;  %v211_v11 = vpop.permute.xlu1 %210 }
  0xe4   : > { %v290_v31 = vsel %vm288_vm6, %v289_v29, %v1046_v27  ;;  %v213_v23 = vmul.f32 %v211_v11, %v1029_v22  ;;  %v340_v26 = vrot.slane %v1007_v6, %v339_v17 }
  0xe5   : > { %v291_v32 = vadd.s32 %v290_v31, %v286_v30 }
  0xe7   : > { %v292_v33 = vadd.s32 536870912, %v291_v32  ;;  %v217_v14 = vpop.permute.xlu1 %216 }
  0xe8   : > { %v219_v41 = vmul.f32 %v217_v14, %v1029_v22  ;;  %v347_v22 = vpop.permute.xlu0 %346 }
  0xe9   : > { %v293_v34 = vshrl.u32 %v292_v33, 30 }
  0xeb   : > { %v294_v35 = vshll.u32 %v293_v34, 30  ;;  %v317_v60 = vsub.s32 4, %v293_v34 }
  0xed   : > { %v295_v37 = vsub.s32 %v291_v32, %v294_v35  ;;  %v318_v3 = vsel %vm233_vm8, %v317_v60, %v293_v34  ;;  %v731_v16 = vpop.eup %730 }
  0xee   : > { %v320_v10 = vsel %vm232_vm9, 0, %v318_v3  ;;  %v220_v28 = vsel %vm207_vm11, %v219_v41, %v731_v16 }
  0xef   : > { %v297_v38 = vsub.s32 0, %v295_v37  ;;  %v324_v12 = vadd.s32 3, %v320_v10  ;;  %v342_v33 = vmul.f32 %v340_v26, %v220_v28 }
  0xf1   : > { %v613_v39 = vmin.u32 %v297_v38, %v295_v37  ;;  %v325_v15 = vand.u32 3, %v324_v12 }
  0xf3   : > { %v299_v40 = vclz %v613_v39  ;;  %vm330_vm10 = vcmp.eq.s32.totalorder %v325_v15, 2  ;;  %vm327_vm12 = vcmp.eq.s32.totalorder %v325_v15, 0  ;;  %vm326_vm13 = vcmp.lt.s32.totalorder %v325_v15, 2 }
  0xf5   : > { %v614_v42 = vadd.s32 4294967294, %v299_v40 }
  0xf7   : > { %vm615_vm7 = vcmp.lt.s32.totalorder %v614_v42, 0 }
  0xf8   : > { %v302_v43 = vsel %vm615_vm7, 0, %v614_v42 }
  0xf9   : > { %v303_v45 = vsub.s32 32, %v302_v43  ;;  %v307_v46 = vsub.s32 4294967266, %v302_v43  ;;  %v304_v47 = vshll.u32 %v295_v37, %v302_v43 }
  0xfb   : > { %v305_v48 = vshrl.u32 %v287_v44, %v303_v45  ;;  %v308_v49 = vadd.s32 127, %v307_v46 }
  0xfd   : > { %v306_v51 = vor.u32 %v305_v48, %v304_v47  ;;  %v309_v52 = vshll.u32 %v308_v49, 23 }
  0xff   : > { %v310_v53 = vor.u32 4788187, %v309_v52  ;;  %v313_v57 = vcvt.s32.f32 %v306_v51 }
 0x101   : > { %v311_v56 = vand.u32 2147483647, %v310_v53 }
 0x103   : > { %v314_v59 = vmul.f32 %v313_v57, %v311_v56 }
 0x105   : > { %v315_v63 = vxor.u32 2147483648, %v314_v59 }
 0x107   : > { %v316_v2 = vsel %vm233_vm8, %v315_v63, %v314_v59 }
 0x108   : > { %v319_v8 = vsel %vm232_vm9, %v1036_v36, %v316_v2 }
 0x109   : > { %732 = vcosq.f32 %v319_v8 }
 0x10a   : > { %734 = vsinq.f32 %v319_v8 }
 0x10b   : > { %736 = vpow2.f32 %v172_v9 }
 0x113   : > { %v733_v18 = vpop.eup %732 }
 0x114   : > { %v735_v19 = vpop.eup %734  ;;  %v331_v20 = vxor.u32 2147483648, %v733_v18 }
 0x115   : > { %v328_v21 = vxor.u32 2147483648, %v735_v19  ;;  %v737_v24 = vpop.eup %736 }
 0x116   : > { %v332_v25 = vsel %vm330_vm10, %v331_v20, %v735_v19  ;;  %v214_v31 = vsel %vm207_vm11, %v213_v23, %v737_v24 }
 0x117   : > { %v329_v27 = vsel %vm327_vm12, %v733_v18, %v328_v21 }
 0x118   : > { %v333_v29 = vsel %vm326_vm13, %v329_v27, %v332_v25 }
 0x119   : > { %v334_v30 = vsel %vm323_vm14, nan, %v333_v29 }
 0x11a   : > { %v335_v32 = vmul.f32 %v334_v30, %v214_v31 }
 0x11c   : > { %v343_v34 = vadd.f32 %v342_v33, %v335_v32 }
 0x11e   : > { %738 = vtanh.f32 %v343_v34 }
 0x128   : > { %v739_v35 = vpop.eup %738 }
 0x129   : > { %v349_v37 = vmul.f32 %v739_v35, %v347_v22 }
 0x12b   : > { %350 = vst [vmem:[%s1012_s23] sm:$0xff] %v349_v37 }
 0x12c PF: > { %p616_p9 = scmp.le.s32.totalorder %s928_s13, 0 }
 0x12d   : > { %v876_v38 = vmov (!%p616_p9), 2   ;;  %v877_v39 = vmov (!%p616_p9), 4   ;;  %v878_v36 = vmov (!%p616_p9), 0   ;;  %v879_v40 = vmov (!%p616_p9), 3  }
 0x12e   : > { %354 = sbr.rel (%p616_p9) target bundleno = 545 (0x221), region = 40  ;;  %740 = vset.pattern.permute.xlu0 (!%p616_p9), %v876_v38  ;;  %742 = vset.pattern.permute.xlu1 (!%p616_p9), %v877_v39  ;;  %v880_v42 = vmov (!%p616_p9), 5   ;;  %v881_v43 = vmov (!%p616_p9), 8   ;;  %v882_v44 = vmov (!%p616_p9), 6   ;;  %v883_v45 = vmov (!%p616_p9), 11  }
 0x12f   : > { %389 = vperm.xlu0 (!%p616_p9), %740, %v1005_v5   ;;  %384 = vperm.xlu1 (!%p616_p9), %742, %v1005_v5   ;;  %v884_v46 = vmov (!%p616_p9), 9   ;;  %v885_v2 = vmov (!%p616_p9), 683565275   ;;  %v886_v8 = vmov (!%p616_p9), 2475754826  }
 0x130   : > { %v887_v11 = vmov (!%p616_p9), 2131351028   ;;  %v888_v14 = vmov (!%p616_p9), 2102212464   ;;  %v889_v17 = vmov (!%p616_p9), 920167782  }
 0x131   : > { %v890_v19 = vmov (!%p616_p9), 1326507024  }
 0x133   : > { %741 = vset.pattern.permute.xlu0 (!%p616_p9), %v878_v36  ;;  %743 = vset.pattern.permute.xlu1 (!%p616_p9), %v879_v40 }
 0x134   : > { %379 = vperm.xlu0 (!%p616_p9), %741, %v1005_v5   ;;  %395 = vperm.xlu1 (!%p616_p9), %743, %v1005_v5  }
 0x138   : > { %744 = vset.pattern.permute.xlu1 %v880_v42  ;;  %745 = vset.pattern.permute.xlu0 %v881_v43 }
 0x139   : > { %357 = vperm.xlu1 %744, %v1005_v5   ;;  %368 = vperm.xlu0 %745, %v1005_v5  }
 0x13d   : > { %746 = vset.pattern.permute.xlu1 %v882_v44  ;;  %748 = vset.pattern.permute.xlu0 %v883_v45 }
 0x13e   : > { %362 = vperm.xlu1 %746, %v1005_v5   ;;  %515 = vperm.xlu0 %748, %v1005_v5  }
 0x142   : > { %747 = vset.pattern.permute.xlu1 %v884_v46 }
 0x143   : > { %373 = vperm.xlu1 %747, %v1005_v5  }
 0x1ae   : > { %v390_v47 = vpop.permute.xlu0 %389  ;;  %v385_v49 = vpop.permute.xlu1 %384 }
 0x1af   : > { %v392_v48 = vmul.f32 %v1010_v7, %v390_v47 }
 0x1b1   : > { %749 = vpow2.f32 %v392_v48 }
 0x1b3   : > { %v380_v50 = vpop.permute.xlu0 %379  ;;  %v396_v52 = vpop.permute.xlu1 %395 }
 0x1b4   : > { %v382_v51 = vmul.f32 %v380_v50, %v1003_v4 }
 0x1b6   : > { %v387_v54 = vadd.f32 %v385_v49, %v382_v51 }
 0x1bb   : > { %v750_v53 = vpop.eup %749 }
 0x1bc   : > { %v398_v55 = vmul.f32 %v750_v53, %v396_v52 }
 0x1be   : > { %v1077_v56 = vsub.f32 %v387_v54, %v398_v55 }
 0x1c0   : > { %v403_v57 = vand.u32 2139095040, %v1077_v56  ;;  %v400_v5 = vand.u32 2147483647, %v1077_v56  ;;  %vm402_vm6 = vcmp.lt.s32.totalorder %v1077_v56, 0  ;;  %vm492_vm11 = vweird.f32 %v1077_v56 }
 0x1c2   : > { %v404_v58 = vshrl.u32 %v403_v57, 23  ;;  %v407_v63 = vand.u32 8388607, %v400_v5  ;;  %vm401_vm7 = vcmp.le.f32.partialorder %v400_v5, 0.7853982 }
 0x1c4   : > { %v617_v59 = vadd.s32 4294967169, %v404_v58  ;;  %v408_v21 = vor.u32 8388608, %v407_v63  ;;  %v358_v63 = vpop.permute.xlu1 %357 }
 0x1c6   : > { %v410_v60 = vadd.s32 1, %v617_v59  ;;  %v448_v35 = vshll.u32 %v408_v21, 8 }
 0x1c8   : > { %vm411_vm15 = vcmp.gt.s32.totalorder %v410_v60, 0 }
 0x1c9   : > { %v412_v61 = vsel %vm411_vm15, %v410_v60, 0 }
 0x1ca   : > { %v414_v62 = vand.u32 31, %v412_v61  ;;  %v413_v1 = vshrl.u32 %v412_v61, 5 }
 0x1cc   : > { %v415_v4 = vsub.s32 32, %v414_v62  ;;  %v417_v3 = vshll.u32 %v885_v2, %v414_v62  ;;  %v420_v9 = vshll.u32 %v886_v8, %v414_v62  ;;  %v423_v13 = vshll.u32 %v887_v11, %v414_v62 }
 0x1cd   : > { %v426_v16 = vshll.u32 %v888_v14, %v414_v62  ;;  %v429_v41 = vshll.u32 %v889_v17, %v414_v62  ;;  %vm432_vm0 = vcmp.lt.s32.totalorder %v413_v1, 1  ;;  %vm435_vm1 = vcmp.lt.s32.totalorder %v413_v1, 4 }
 0x1ce   : > { %v418_v10 = vshrl.u32 %v886_v8, %v415_v4  ;;  %v421_v12 = vshrl.u32 %v887_v11, %v415_v4  ;;  %v424_v15 = vshrl.u32 %v888_v14, %v415_v4  ;;  %v427_v18 = vshrl.u32 %v889_v17, %v415_v4  ;;  %v369_v11 = vpop.permute.xlu0 %368 }
 0x1cf   : > { %v430_v20 = vshrl.u32 %v890_v19, %v415_v4  ;;  %v416_v31 = vshrl.u32 %v885_v2, %v415_v4  ;;  %vm434_vm2 = vcmp.lt.s32.totalorder %v413_v1, 3  ;;  %vm433_vm3 = vcmp.lt.s32.totalorder %v413_v1, 2 }
 0x1d0   : > { %v419_v23 = vor.u32 %v418_v10, %v417_v3  ;;  %v422_v24 = vor.u32 %v421_v12, %v420_v9  ;;  %v425_v25 = vor.u32 %v424_v15, %v423_v13  ;;  %v428_v26 = vor.u32 %v427_v18, %v426_v16  ;;  %v363_v10 = vpop.permute.xlu1 %362 }
 0x1d1   : > { %v431_v27 = vor.u32 %v430_v20, %v429_v41  ;;  %v371_v16 = vmul.f32 %v1010_v7, %v369_v11  ;;  %v360_v41 = vmul.f32 %v1010_v7, %v358_v63 }
 0x1d2   : > { %v437_v28 = vsel %vm435_vm1, %v425_v25, 2102212464  ;;  %v440_v29 = vsel %vm432_vm0, %v419_v23, %v422_v24  ;;  %v444_v30 = vsel %vm432_vm0, %v422_v24, %v425_v25  ;;  %v441_v32 = vsel %vm435_vm1, %v428_v26, 920167782 }
 0x1d3   : > { %v445_v33 = vsel %vm435_vm1, %v431_v27, 1326507024  ;;  %v442_v34 = vsel %vm434_vm2, %v425_v25, %v441_v32  ;;  %v436_v37 = vsel %vm432_vm0, %v416_v31, %v419_v23  ;;  %v438_v38 = vsel %vm434_vm2, %v422_v24, %v437_v28 }
 0x1d4   : > { %v446_v22 = vsel %vm434_vm2, %v428_v26, %v445_v33  ;;  %v443_v39 = vsel %vm433_vm3, %v440_v29, %v442_v34  ;;  %v439_v45 = vsel %vm433_vm3, %v436_v37, %v438_v38  ;;  %v374_v17 = vpop.permute.xlu1 %373  ;;  %v365_v25 = vadd.f32 %v363_v10, %v360_v41 }
 0x1d5   : > { %v447_v36 = vsel %vm433_vm3, %v444_v30, %v446_v22  ;;  %v1086_v43 = vmul.u32.u64.low %v448_v35, %v443_v39  ;;  %v1087_v44 = vmul.u32.u64.high %v448_v35, %v443_v39, %v1086_v43  ;;  %v455_v47 = vmul.u32 %v448_v35, %v439_v45 }
 0x1d6   : > { %v1083_v40 = vmul.u32.u64.low %v448_v35, %v447_v36  ;;  %v1084_v42 = vmul.u32.u64.high %v448_v35, %v447_v36, %v1083_v40  ;;  %v376_v21 = vadd.f32 %v374_v17, %v371_v16  ;;  %v507_v26 = vshrl.u32 %v150_v0, 7 }
 0x1d7   : > { %v458_v46 = vadd.s32 1, %v1087_v44  ;;  %v516_v40 = vpop.permute.xlu0 %515 }
 0x1d8   : > { %vm457_vm4 = vc.u32 %v1084_v42, %v1086_v43  ;;  %v456_v60 = vadd.s32 %v1086_v43, %v1084_v42  ;;  %v508_v28 = vsub.s32 0, %v507_v26 }
 0x1d9   : > { %v459_v48 = vsel %vm457_vm4, %v458_v46, %v1087_v44 }
 0x1da   : > { %v460_v49 = vadd.s32 %v459_v48, %v455_v47  ;;  %v509_v5 = vrot.slane %v1007_v6, %v508_v28 }
 0x1dc   : > { %v461_v50 = vadd.s32 536870912, %v460_v49 }
 0x1de   : > { %v462_v51 = vshrl.u32 %v461_v50, 30 }
 0x1e0   : > { %v463_v52 = vshll.u32 %v462_v51, 30  ;;  %v486_v15 = vsub.s32 4, %v462_v51 }
 0x1e2   : > { %v464_v53 = vsub.s32 %v460_v49, %v463_v52  ;;  %v487_v20 = vsel %vm402_vm6, %v486_v15, %v462_v51 }
 0x1e3   : > { %v489_v24 = vsel %vm401_vm7, 0, %v487_v20 }
 0x1e4   : > { %v466_v54 = vsub.s32 0, %v464_v53  ;;  %v493_v27 = vadd.s32 3, %v489_v24 }
 0x1e6   : > { %v618_v55 = vmin.u32 %v466_v54, %v464_v53  ;;  %v494_v29 = vand.u32 3, %v493_v27 }
 0x1e8   : > { %v468_v57 = vclz %v618_v55  ;;  %vm499_vm8 = vcmp.eq.s32.totalorder %v494_v29, 2  ;;  %vm496_vm9 = vcmp.eq.s32.totalorder %v494_v29, 0  ;;  %vm495_vm10 = vcmp.lt.s32.totalorder %v494_v29, 2 }
 0x1ea   : > { %v619_v58 = vadd.s32 4294967294, %v468_v57 }
 0x1ec   : > { %vm620_vm5 = vcmp.lt.s32.totalorder %v619_v58, 0 }
 0x1ed   : > { %v471_v59 = vsel %vm620_vm5, 0, %v619_v58 }
 0x1ee   : > { %v472_v61 = vsub.s32 32, %v471_v59  ;;  %v476_v62 = vsub.s32 4294967266, %v471_v59  ;;  %v473_v4 = vshll.u32 %v464_v53, %v471_v59 }
 0x1f0   : > { %v474_v1 = vshrl.u32 %v456_v60, %v472_v61  ;;  %v477_v2 = vadd.s32 127, %v476_v62 }
 0x1f2   : > { %v475_v3 = vor.u32 %v474_v1, %v473_v4  ;;  %v478_v8 = vshll.u32 %v477_v2, 23 }
 0x1f4   : > { %v479_v9 = vor.u32 4788187, %v478_v8  ;;  %v482_v13 = vcvt.s32.f32 %v475_v3 }
 0x1f6   : > { %v480_v12 = vand.u32 2147483647, %v479_v9 }
 0x1f8   : > { %v483_v14 = vmul.f32 %v482_v13, %v480_v12 }
 0x1fa   : > { %v484_v18 = vxor.u32 2147483648, %v483_v14 }
 0x1fc   : > { %v485_v19 = vsel %vm402_vm6, %v484_v18, %v483_v14 }
 0x1fd   : > { %v488_v23 = vsel %vm401_vm7, %v1077_v56, %v485_v19 }
 0x1fe   : > { %751 = vcosq.f32 %v488_v23 }
 0x1ff   : > { %753 = vsinq.f32 %v488_v23 }
 0x200   : > { %755 = vpow2.f32 %v376_v21 }
 0x201   : > { %757 = vpow2.f32 %v365_v25 }
 0x208   : > { %v752_v7 = vpop.eup %751 }
 0x209   : > { %v754_v30 = vpop.eup %753  ;;  %v500_v31 = vxor.u32 2147483648, %v752_v7 }
 0x20a   : > { %v756_v32 = vpop.eup %755  ;;  %v497_v33 = vxor.u32 2147483648, %v754_v30 }
 0x20b   : > { %v501_v34 = vsel %vm499_vm8, %v500_v31, %v754_v30  ;;  %v511_v35 = vmul.f32 %v756_v32, %v509_v5  ;;  %v758_v37 = vpop.eup %757 }
 0x20c   : > { %v498_v22 = vsel %vm496_vm9, %v752_v7, %v497_v33 }
 0x20d   : > { %v502_v0 = vsel %vm495_vm10, %v498_v22, %v501_v34 }
 0x20e   : > { %v503_v38 = vsel %vm492_vm11, nan, %v502_v0 }
 0x20f   : > { %v504_v39 = vmul.f32 %v758_v37, %v503_v38 }
 0x211   : > { %v512_v36 = vadd.f32 %v511_v35, %v504_v39 }
 0x213   : > { %759 = vtanh.f32 %v512_v36 }
 0x21d   : > { %v760_v42 = vpop.eup %759 }
 0x21e   : > { %v518_v6 = vmul.f32 %v760_v42, %v516_v40 }
 0x220   : > { %519 = vst [vmem:[%s1012_s23] sm:$0xff] %v518_v6 }
 0x221 PF: > { %s1108_s26 = scalar_lea.hbm %s1149_s2, %s609_s14  ;;  %s534_s27 = sshll.u32 %s1012_s23, 4  ;;  %s535_s27 = int_to_ptr.vmem [resolvable:$true] %s534_s27 }
 0x222   : > { %s521_s28 = scalar_lea.sflag [#allocation4], %s143_s7  ;;  %s789_s29 = scalar_lea.vmem %s535_s27, 128 }
 0x223   : > { %p790_p10 = scmp.ne.s32.totalorder %s535_s27, %s789_s29  ;;  %p1161_p11 = scmp.ne.s32.totalorder %s1153_s19, 0 }
 0x224   : > { %s891_s30 = smov [#allocation5]  }
 0x225   : > { %p791_p13 = pnand %p790_p10, %p1161_p11  ;;  %s793_s3 = sshll.u32 %s891_s30, 4  ;;  %s794_s3 = int_to_ptr.vmem [resolvable:$false] %s793_s3 }
 0x226   : > { %s795_s13 = scalar_lea.vmem %s794_s3, 256  ;;  %p796_p4 = scmp.lt.s32.totalorder %s535_s27, %s794_s3 }
 0x227   : > { %p792_p3 = pneg %p791_p13  ;;  %p797_p7 = scmp.lt.s32.totalorder %s795_s13, %s789_s29 }
 0x229   : > { %p798_p8 = por %p797_p7, %p796_p4 }
 0x22b   : > { %p799_p12 = pnand %p798_p8, %p792_p3 }
 0x22d   : > { %802 = shalt.err (!%p799_p12)
}
 0x22e   : > { %s803_s4 = scalar_lea.hbm %s1108_s26, 128  ;;  %s807_s7 = scalar_lea.hbm %s1149_s2, 384 }
 0x22f   : > { %p804_p0 = scmp.ne.s32.totalorder %s1108_s26, %s803_s4  ;;  %p808_p5 = scmp.lt.u32.totalorder %s1108_s26, %s1149_s2 }
 0x230   : > { %p809_p6 = scmp.lt.u32.totalorder %s807_s7, %s803_s4  ;;  %p811_p10 = scmp.lt.u32.totalorder %s803_s4, %s1108_s26 }
 0x231   : > { %p805_p2 = pnand %p804_p0, %p1161_p11 }
 0x232   : > { %p810_p9 = por %p809_p6, %p808_p5 }
 0x233   : > { %p806_p1 = pneg %p805_p2 }
 0x234   : > { %p812_p13 = por %p811_p10, %p810_p9 }
 0x236   : > { %p813_p3 = pnand %p812_p13, %p806_p1 }
 0x238   : > { %816 = shalt.err (!%p813_p3)
}
 0x239   : > { %637 = dma.vmem_to_hbm [thread:$0]  (%p1161_p11), %s535_s27, 128, %s1108_s26, %s521_s28  }
 0x23a PF: > { %p649_p4 = scmp.ge.s32.totalorder %s855_s12, 2  ;;  %s546_s16 = sand.u32 1, %s843_s9  }
 0x23b   : > { %p1162_p7 = scmp.ne.s32.totalorder %s1154_s20, 0  ;;  %s547_s17 = scalar_lea.sflag [#allocation4], %s546_s16 }
 0x23d   : > { %p644_p8 = pnand %p649_p4, %p1162_p7 }
 0x23f   : > { %838 = dma.done.wait (!%p644_p8), %s547_s17, 128  }
 0x240   : > { %840 = vsyncadd (!%p644_p8), %s547_s17, 4294967168  ;;  %p13_p12 = scmp.ge.s32.totalorder %s932_s15, 5   ;;  %s1163_s9 = smov %s847_s10 }
 0x241   : > { %s1164_s10 = smov %s851_s11  ;;  %s1165_s11 = smov %s943_s18 }
 0x242   : > { %s1166_s12 = smov %s932_s15  ;;  %15 = sbr.rel (!%p13_p12) target bundleno = 4 (0x4), region = 76 }
 0x249   :  { %552 = vsyncpa [#allocation3], 1 }
 0x24a   :  { %554 = vsyncpa [#allocation3 + $0x1], 1 }
 0x24b   :  { %555 = vsyncpa [#allocation4], 1 }
 0x24c   :  { %557 = vsyncpa [#allocation4 + $0x1], 1 }

</bundles_post_ra>
